<compile_context>
chip_gen: v7x
topology: tpu7x:2x2x1
jax: 0.10.0
libtpu: 0.0.40
codegen_flags: <defaults>
</compile_context>

<pallas_src>
import functools

import jax
import jax.numpy as jnp
from jax.experimental import pallas as pl
from jax.experimental.pallas import tpu as pltpu


def _round_up(v, m):
    return ((v + m - 1) // m) * m


def gru_series_forward(x, h0, params, *, t_chunk=4, b_block=8,
                       compute_dtype=jnp.float32):
    """x: [B, T, Din], h0: [1, B, H] or None.

    Returns (outs [B, T, O], h_state [1, B, H]) matching the PyTorch module.
    compute_dtype: dtype of the MXU operands (use jnp.bfloat16 on v6e/v7x for
    2x matmul throughput; accumulation and gate math stay in f32).
    """
    B, T, Din = x.shape
    H = params["w_hh"].shape[1]
    O = params["w_out"].shape[0]

    H_pad = _round_up(H, 128)          # gate boundaries land on 128-lane tiles
    O_pad = _round_up(O, 128)          # lane-dense output stores
    B_pad = _round_up(B, b_block)      # b_block is a multiple of 8 (f32 sublane)
    T_pad = _round_up(T, t_chunk)

    if h0 is None:
        h0 = jnp.zeros((1, B, H), jnp.float32)

    f32 = jnp.float32
    w_ih = params["w_ih"].astype(f32)    # [3H, Din]  (gate order r, z, n)
    w_hh = params["w_hh"].astype(f32)    # [3H, H]
    b_ih = params["b_ih"].astype(f32)    # [3H]
    b_hh = params["b_hh"].astype(f32)    # [3H]
    w_out = params["w_out"].astype(f32)  # [O, H]
    b_out = params["b_out"].astype(f32)  # [O]

    def pad_gates_T(w, in_dim_pad):
        # [3H, in_dim] -> transposed & per-gate H-padded [in_dim_pad, 3*H_pad]
        out = jnp.zeros((in_dim_pad, 3 * H_pad), f32)
        in_dim = w.shape[1]
        for g in range(3):
            out = out.at[:in_dim, g * H_pad:g * H_pad + H].set(
                w[g * H:(g + 1) * H, :].T)
        return out

    wih_p = pad_gates_T(w_ih, Din)       # [Din,   3*H_pad]
    whh_p = pad_gates_T(w_hh, H_pad)     # [H_pad, 3*H_pad]

    # Bias folding: r/z gates always see b_ih + b_hh, so fold both into the
    # hoisted gi pre-pass; only the n-gate's b_hh stays in the recurrence
    # (it is scaled by r).
    bgi = jnp.zeros((1, 3 * H_pad), f32)
    bgh = jnp.zeros((1, 3 * H_pad), f32)
    bgi = bgi.at[0, 0 * H_pad:0 * H_pad + H].set(b_ih[0:H] + b_hh[0:H])
    bgi = bgi.at[0, 1 * H_pad:1 * H_pad + H].set(b_ih[H:2 * H] + b_hh[H:2 * H])
    bgi = bgi.at[0, 2 * H_pad:2 * H_pad + H].set(b_ih[2 * H:3 * H])
    bgh = bgh.at[0, 2 * H_pad:2 * H_pad + H].set(b_hh[2 * H:3 * H])

    wout_p = jnp.zeros((H_pad, O_pad), f32).at[:H, :O].set(w_out.T)
    bout_p = jnp.zeros((1, O_pad), f32).at[0, :O].set(b_out)

    # Time-major, padded activations / initial state (single fused XLA pad+transpose).
    x_tm = jnp.zeros((T_pad, B_pad, Din), f32)
    x_tm = x_tm.at[:T, :B, :].set(jnp.transpose(x.astype(f32), (1, 0, 2)))
    h0_p = jnp.zeros((B_pad, H_pad), f32).at[:B, :H].set(h0[0].astype(f32))

    # MXU operands in compute_dtype (bf16 on v6e/v7x); state/gates stay f32.
    x_tm = x_tm.astype(compute_dtype)
    wih_c = wih_p.astype(compute_dtype)
    whh_c = whh_p.astype(compute_dtype)
    wout_c = wout_p.astype(compute_dtype)

    nb = B_pad // b_block
    nt = T_pad // t_chunk
    Tc, Bb, Hp = t_chunk, b_block, H_pad

    def kernel(x_ref, h0_ref, wih_ref, whh_ref, bgi_ref, bgh_ref,
               wout_ref, bout_ref, outs_ref, hT_ref, h_carry):
        tc_idx = pl.program_id(1)

        @pl.when(tc_idx == 0)
        def _init():
            h_carry[...] = h0_ref[...]

        # ---- (1) hoisted input->hidden gates for the whole chunk: one matmul.
        x2d = x_ref[...].reshape(Tc * Bb, Din)                    # (Tc*Bb, Din)
        gi = jnp.dot(x2d, wih_ref[...],
                     preferred_element_type=jnp.float32) + bgi_ref[...]

        whh = whh_ref[...]
        bgh_v = bgh_ref[...]

        # ---- (2) serial recurrence: only h @ W_hh on the critical path.
        h = h_carry[...]
        hs = []
        for i in range(Tc):  # trace-time unrolled -> LLO overlaps MXU/EUP work
            gi_t = gi[i * Bb:(i + 1) * Bb, :]                     # (Bb, 3*Hp)
            gh = jnp.dot(h.astype(compute_dtype), whh,
                         preferred_element_type=jnp.float32) + bgh_v
            r = jax.nn.sigmoid(gi_t[:, 0:Hp] + gh[:, 0:Hp])
            z = jax.nn.sigmoid(gi_t[:, Hp:2 * Hp] + gh[:, Hp:2 * Hp])
            n = jnp.tanh(gi_t[:, 2 * Hp:3 * Hp] + r * gh[:, 2 * Hp:3 * Hp])
            h_new = (1.0 - z) * n + z * h
            # Ignore zero-padded timesteps so the carried / final state is exact.
            h = jnp.where(tc_idx * Tc + i < T, h_new, h)
            hs.append(h)
        h_carry[...] = h
        hT_ref[...] = h.astype(hT_ref.dtype)

        # ---- (3) hoisted per-timestep Linear: one batched matmul, lane-dense store.
        h_hist = jnp.concatenate(hs, axis=0)                      # (Tc*Bb, Hp)
        outs = jnp.dot(h_hist.astype(compute_dtype), wout_ref[...],
                       preferred_element_type=jnp.float32) + bout_ref[...]
        outs_ref[...] = outs.reshape(Tc, Bb, O_pad).astype(outs_ref.dtype)

    full = lambda arr: pl.BlockSpec(arr.shape, lambda b, t: (0,) * arr.ndim)

    outs_pad, hT_pad = pl.pallas_call(
        kernel,
        out_shape=(jax.ShapeDtypeStruct((T_pad, B_pad, O_pad), jnp.float32),
                   jax.ShapeDtypeStruct((B_pad, H_pad), jnp.float32)),
        grid_spec=pltpu.PrefetchScalarGridSpec(
            num_scalar_prefetch=0,
            grid=(nb, nt),
            in_specs=[
                pl.BlockSpec((Tc, Bb, Din), lambda b, t: (t, b, 0)),  # x chunk
                pl.BlockSpec((Bb, H_pad), lambda b, t: (b, 0)),       # h0
                full(wih_c), full(whh_c), full(bgi), full(bgh),
                full(wout_c), full(bout_p),
            ],
            out_specs=(
                pl.BlockSpec((Tc, Bb, O_pad), lambda b, t: (t, b, 0)),  # outs
                pl.BlockSpec((Bb, H_pad), lambda b, t: (b, 0)),         # h_T
            ),
            scratch_shapes=[pltpu.VMEM((Bb, H_pad), jnp.float32)],      # h carry
        ),
        compiler_params=pltpu.CompilerParams(
            dimension_semantics=("parallel", "arbitrary"),
            vmem_limit_bytes=32 * 1024 * 1024,
        ),
    )(x_tm, h0_p, wih_c, whh_c, bgi, bgh, wout_c, bout_p)

    outs = jnp.transpose(outs_pad[:T, :B, :O], (1, 0, 2))   # [B, T, O]
    h_state = hT_pad[:B, :H][None, :, :]                    # [1, B, H]
    return outs, h_state


def _reference_forward(x, h0, params):
    """Pure-JAX reference mirroring torch.nn.GRU + per-step Linear."""
    B, T, Din = x.shape
    H = params["w_hh"].shape[1]
    if h0 is None:
        h0 = jnp.zeros((1, B, H), jnp.float32)
    h = h0[0]
    w_ih, w_hh = params["w_ih"], params["w_hh"]
    b_ih, b_hh = params["b_ih"], params["b_hh"]
    outs = []
    for t in range(T):
        x_t = x[:, t, :]
        gi = x_t @ w_ih.T + b_ih
        gh = h @ w_hh.T + b_hh
        r = jax.nn.sigmoid(gi[:, :H] + gh[:, :H])
        z = jax.nn.sigmoid(gi[:, H:2 * H] + gh[:, H:2 * H])
        n = jnp.tanh(gi[:, 2 * H:] + r * gh[:, 2 * H:])
        h = (1.0 - z) * n + z * h
        outs.append(h @ params["w_out"].T + params["b_out"])
    return jnp.stack(outs, axis=1), h[None, :, :]


def init_params(key, input_size, hidden_size, output_size):
    ks = jax.random.split(key, 6)
    k = 1.0 / jnp.sqrt(hidden_size)
    u = lambda kk, shape: jax.random.uniform(kk, shape, jnp.float32, -k, k)
    return {
        "w_ih": u(ks[0], (3 * hidden_size, input_size)),
        "w_hh": u(ks[1], (3 * hidden_size, hidden_size)),
        "b_ih": u(ks[2], (3 * hidden_size,)),
        "b_hh": u(ks[3], (3 * hidden_size,)),
        "w_out": u(ks[4], (output_size, hidden_size)),
        "b_out": u(ks[5], (output_size,)),
    }


if __name__ == "__main__":
    B, T, Din, H, O = 2, 8, 16, 32, 5
    key = jax.random.PRNGKey(0)
    kx, kh, kp = jax.random.split(key, 3)

    x = jax.random.normal(kx, (B, T, Din), jnp.float32)
    h0 = jax.random.normal(kh, (1, B, H), jnp.float32)
    params = init_params(kp, Din, H, O)

    # t_chunk=3 deliberately does not divide T=8 so the chunk-carry and the
    # padded-timestep masking paths are both exercised.
    outs, h_state = gru_series_forward(x, h0, params, t_chunk=3)
    outs = jax.block_until_ready(outs)
    h_state = jax.block_until_ready(h_state)

    ref_outs, ref_h = _reference_forward(x, h0, params)
    assert outs.shape == (B, T, O) and h_state.shape == (1, B, H)
    assert jnp.allclose(outs, ref_outs, atol=1e-4, rtol=1e-4), \
        float(jnp.max(jnp.abs(outs - ref_outs)))
    assert jnp.allclose(h_state, ref_h, atol=1e-4, rtol=1e-4), \
        float(jnp.max(jnp.abs(h_state - ref_h)))

    print("KERNEL_OK")
</pallas_src>

<mosaic_0001>
module attributes {stable_mosaic.version = 11 : i64} {
  func.func @kernel(%arg0: i32, %arg1: i32, %arg2: memref<3x8x16xf32, #tpu.memory_space<vmem>>, %arg3: memref<8x128xf32, #tpu.memory_space<vmem>>, %arg4: memref<16x384xf32, #tpu.memory_space<vmem>>, %arg5: memref<128x384xf32, #tpu.memory_space<vmem>>, %arg6: memref<1x384xf32, #tpu.memory_space<vmem>>, %arg7: memref<1x384xf32, #tpu.memory_space<vmem>>, %arg8: memref<128x128xf32, #tpu.memory_space<vmem>>, %arg9: memref<1x128xf32, #tpu.memory_space<vmem>>, %arg10: memref<3x8x128xf32, #tpu.memory_space<vmem>>, %arg11: memref<8x128xf32, #tpu.memory_space<vmem>>, %arg12: memref<8x128xf32, #tpu.memory_space<vmem>>) attributes {dimension_semantics = [#tpu.dimension_semantics<parallel>, #tpu.dimension_semantics<arbitrary>], iteration_bounds = array<i64: 1, 3>, scalar_prefetch = 0 : i64, scratch_operands = 1 : i64, tpu.core_type = #tpu.core_type<tc>, window_params = [{transform_indices = @transform_0, window_bounds = array<i64: 3, 8, 16>}, {transform_indices = @transform_1, window_bounds = array<i64: 8, 128>}, {pipeline_mode = #tpu.pipeline_mode<synchronous>, transform_indices = @transform_2, window_bounds = array<i64: 16, 384>}, {pipeline_mode = #tpu.pipeline_mode<synchronous>, transform_indices = @transform_3, window_bounds = array<i64: 128, 384>}, {pipeline_mode = #tpu.pipeline_mode<synchronous>, transform_indices = @transform_4, window_bounds = array<i64: 1, 384>}, {pipeline_mode = #tpu.pipeline_mode<synchronous>, transform_indices = @transform_5, window_bounds = array<i64: 1, 384>}, {pipeline_mode = #tpu.pipeline_mode<synchronous>, transform_indices = @transform_6, window_bounds = array<i64: 128, 128>}, {pipeline_mode = #tpu.pipeline_mode<synchronous>, transform_indices = @transform_7, window_bounds = array<i64: 1, 128>}, {transform_indices = @transform_8, window_bounds = array<i64: 3, 8, 128>}, {transform_indices = @transform_9, window_bounds = array<i64: 8, 128>}]} {
    %c0_i32 = arith.constant 0 : i32
    %0 = arith.cmpi eq, %arg1, %c0_i32 : i32
    %1 = arith.extui %0 : i1 to i32
    %c0_i32_0 = arith.constant 0 : i32
    %2 = arith.cmpi ne, %1, %c0_i32_0 : i32
    scf.if %2 {
      %c0_42 = arith.constant 0 : index
      %c0_43 = arith.constant 0 : index
      %125 = vector.load %arg3[%c0_42, %c0_43] : memref<8x128xf32, #tpu.memory_space<vmem>>, vector<8x128xf32>
      %c0_44 = arith.constant 0 : index
      %c0_45 = arith.constant 0 : index
      %126 = vector.load %arg12[%c0_44, %c0_45] : memref<8x128xf32, #tpu.memory_space<vmem>>, vector<8x128xf32>
      tpu.vector_store %arg12[%c0_44, %c0_45], %125 {strides = array<i32>} : memref<8x128xf32, #tpu.memory_space<vmem>>, vector<8x128xf32>,
    } else {
    }
    %c0 = arith.constant 0 : index
    %c0_1 = arith.constant 0 : index
    %c0_2 = arith.constant 0 : index
    %3 = vector.load %arg2[%c0, %c0_1, %c0_2] : memref<3x8x16xf32, #tpu.memory_space<vmem>>, vector<3x8x16xf32>
    %4 = vector.shape_cast %3 : vector<3x8x16xf32> to vector<24x16xf32>
    %c0_3 = arith.constant 0 : index
    %c0_4 = arith.constant 0 : index
    %5 = vector.load %arg4[%c0_3, %c0_4] : memref<16x384xf32, #tpu.memory_space<vmem>>, vector<16x384xf32>
    %cst = arith.constant dense<0.000000e+00> : vector<24x384xf32>
    %6 = tpu.matmul %4, %5, %cst {dimension_numbers = #tpu.dot_dimension_numbers<[1], [0], [0], [1], [0, 0, 1, 1], [], []>} : vector<24x16xf32>, vector<16x384xf32>, vector<24x384xf32> -> vector<24x384xf32>
    %c0_5 = arith.constant 0 : index
    %c0_6 = arith.constant 0 : index
    %7 = vector.load %arg6[%c0_5, %c0_6] : memref<1x384xf32, #tpu.memory_space<vmem>>, vector<1x384xf32>
    %8 = vector.broadcast %7 : vector<1x384xf32> to vector<24x384xf32>
    %9 = arith.addf %6, %8 : vector<24x384xf32>
    %c0_7 = arith.constant 0 : index
    %c0_8 = arith.constant 0 : index
    %10 = vector.load %arg5[%c0_7, %c0_8] : memref<128x384xf32, #tpu.memory_space<vmem>>, vector<128x384xf32>
    %c0_9 = arith.constant 0 : index
    %c0_10 = arith.constant 0 : index
    %11 = vector.load %arg7[%c0_9, %c0_10] : memref<1x384xf32, #tpu.memory_space<vmem>>, vector<1x384xf32>
    %c0_11 = arith.constant 0 : index
    %c0_12 = arith.constant 0 : index
    %12 = vector.load %arg12[%c0_11, %c0_12] : memref<8x128xf32, #tpu.memory_space<vmem>>, vector<8x128xf32>
    %13 = vector.extract_strided_slice %9 {offsets = [0, 0], sizes = [8, 384], strides = [1, 1]} : vector<24x384xf32> to vector<8x384xf32>
    %cst_13 = arith.constant dense<0.000000e+00> : vector<8x384xf32>
    %14 = tpu.matmul %12, %10, %cst_13 {dimension_numbers = #tpu.dot_dimension_numbers<[1], [0], [0], [1], [0, 0, 1, 1], [], []>} : vector<8x128xf32>, vector<128x384xf32>, vector<8x384xf32> -> vector<8x384xf32>
    %15 = vector.broadcast %11 : vector<1x384xf32> to vector<8x384xf32>
    %16 = arith.addf %14, %15 : vector<8x384xf32>
    %17 = vector.extract_strided_slice %13 {offsets = [0, 0], sizes = [8, 128], strides = [1, 1]} : vector<8x384xf32> to vector<8x128xf32>
    %18 = vector.extract_strided_slice %16 {offsets = [0, 0], sizes = [8, 128], strides = [1, 1]} : vector<8x384xf32> to vector<8x128xf32>
    %19 = arith.addf %17, %18 : vector<8x128xf32>
    %20 = arith.negf %19 : vector<8x128xf32>
    %21 = math.exp %20 : vector<8x128xf32>
    %cst_14 = arith.constant 1.000000e+00 : f32
    %22 = vector.broadcast %cst_14 : f32 to vector<8x128xf32>
    %23 = arith.addf %22, %21 : vector<8x128xf32>
    %24 = arith.divf %22, %23 : vector<8x128xf32>
    %25 = vector.extract_strided_slice %13 {offsets = [0, 128], sizes = [8, 128], strides = [1, 1]} : vector<8x384xf32> to vector<8x128xf32>
    %26 = vector.extract_strided_slice %16 {offsets = [0, 128], sizes = [8, 128], strides = [1, 1]} : vector<8x384xf32> to vector<8x128xf32>
    %27 = arith.addf %25, %26 : vector<8x128xf32>
    %28 = arith.negf %27 : vector<8x128xf32>
    %29 = math.exp %28 : vector<8x128xf32>
    %cst_15 = arith.constant 1.000000e+00 : f32
    %30 = vector.broadcast %cst_15 : f32 to vector<8x128xf32>
    %31 = arith.addf %30, %29 : vector<8x128xf32>
    %32 = arith.divf %30, %31 : vector<8x128xf32>
    %33 = vector.extract_strided_slice %13 {offsets = [0, 256], sizes = [8, 128], strides = [1, 1]} : vector<8x384xf32> to vector<8x128xf32>
    %34 = vector.extract_strided_slice %16 {offsets = [0, 256], sizes = [8, 128], strides = [1, 1]} : vector<8x384xf32> to vector<8x128xf32>
    %35 = arith.mulf %24, %34 : vector<8x128xf32>
    %36 = arith.addf %33, %35 : vector<8x128xf32>
    %37 = math.tanh %36 : vector<8x128xf32>
    %cst_16 = arith.constant 1.000000e+00 : f32
    %38 = vector.broadcast %cst_16 : f32 to vector<8x128xf32>
    %39 = arith.subf %38, %32 : vector<8x128xf32>
    %40 = arith.mulf %39, %37 : vector<8x128xf32>
    %41 = arith.mulf %32, %12 : vector<8x128xf32>
    %42 = arith.addf %40, %41 : vector<8x128xf32>
    %c3_i32 = arith.constant 3 : i32
    %43 = arith.muli %arg1, %c3_i32 : i32
    %c0_i32_17 = arith.constant 0 : i32
    %44 = arith.addi %43, %c0_i32_17 : i32
    %c8_i32 = arith.constant 8 : i32
    %45 = arith.cmpi slt, %44, %c8_i32 : i32
    %46 = arith.select %45, %42, %12 : vector<8x128xf32>
    %47 = vector.extract_strided_slice %9 {offsets = [8, 0], sizes = [8, 384], strides = [1, 1]} : vector<24x384xf32> to vector<8x384xf32>
    %cst_18 = arith.constant dense<0.000000e+00> : vector<8x384xf32>
    %48 = tpu.matmul %46, %10, %cst_18 {dimension_numbers = #tpu.dot_dimension_numbers<[1], [0], [0], [1], [0, 0, 1, 1], [], []>} : vector<8x128xf32>, vector<128x384xf32>, vector<8x384xf32> -> vector<8x384xf32>
    %49 = vector.broadcast %11 : vector<1x384xf32> to vector<8x384xf32>
    %50 = arith.addf %48, %49 : vector<8x384xf32>
    %51 = vector.extract_strided_slice %47 {offsets = [0, 0], sizes = [8, 128], strides = [1, 1]} : vector<8x384xf32> to vector<8x128xf32>
    %52 = vector.extract_strided_slice %50 {offsets = [0, 0], sizes = [8, 128], strides = [1, 1]} : vector<8x384xf32> to vector<8x128xf32>
    %53 = arith.addf %51, %52 : vector<8x128xf32>
    %54 = arith.negf %53 : vector<8x128xf32>
    %55 = math.exp %54 : vector<8x128xf32>
    %cst_19 = arith.constant 1.000000e+00 : f32
    %56 = vector.broadcast %cst_19 : f32 to vector<8x128xf32>
    %57 = arith.addf %56, %55 : vector<8x128xf32>
    %58 = arith.divf %56, %57 : vector<8x128xf32>
    %59 = vector.extract_strided_slice %47 {offsets = [0, 128], sizes = [8, 128], strides = [1, 1]} : vector<8x384xf32> to vector<8x128xf32>
    %60 = vector.extract_strided_slice %50 {offsets = [0, 128], sizes = [8, 128], strides = [1, 1]} : vector<8x384xf32> to vector<8x128xf32>
    %61 = arith.addf %59, %60 : vector<8x128xf32>
    %62 = arith.negf %61 : vector<8x128xf32>
    %63 = math.exp %62 : vector<8x128xf32>
    %cst_20 = arith.constant 1.000000e+00 : f32
    %64 = vector.broadcast %cst_20 : f32 to vector<8x128xf32>
    %65 = arith.addf %64, %63 : vector<8x128xf32>
    %66 = arith.divf %64, %65 : vector<8x128xf32>
    %67 = vector.extract_strided_slice %47 {offsets = [0, 256], sizes = [8, 128], strides = [1, 1]} : vector<8x384xf32> to vector<8x128xf32>
    %68 = vector.extract_strided_slice %50 {offsets = [0, 256], sizes = [8, 128], strides = [1, 1]} : vector<8x384xf32> to vector<8x128xf32>
    %69 = arith.mulf %58, %68 : vector<8x128xf32>
    %70 = arith.addf %67, %69 : vector<8x128xf32>
    %71 = math.tanh %70 : vector<8x128xf32>
    %cst_21 = arith.constant 1.000000e+00 : f32
    %72 = vector.broadcast %cst_21 : f32 to vector<8x128xf32>
    %73 = arith.subf %72, %66 : vector<8x128xf32>
    %74 = arith.mulf %73, %71 : vector<8x128xf32>
    %75 = arith.mulf %66, %46 : vector<8x128xf32>
    %76 = arith.addf %74, %75 : vector<8x128xf32>
    %c3_i32_22 = arith.constant 3 : i32
    %77 = arith.muli %arg1, %c3_i32_22 : i32
    %c1_i32 = arith.constant 1 : i32
    %78 = arith.addi %77, %c1_i32 : i32
    %c8_i32_23 = arith.constant 8 : i32
    %79 = arith.cmpi slt, %78, %c8_i32_23 : i32
    %80 = arith.select %79, %76, %46 : vector<8x128xf32>
    %81 = vector.extract_strided_slice %9 {offsets = [16, 0], sizes = [8, 384], strides = [1, 1]} : vector<24x384xf32> to vector<8x384xf32>
    %cst_24 = arith.constant dense<0.000000e+00> : vector<8x384xf32>
    %82 = tpu.matmul %80, %10, %cst_24 {dimension_numbers = #tpu.dot_dimension_numbers<[1], [0], [0], [1], [0, 0, 1, 1], [], []>} : vector<8x128xf32>, vector<128x384xf32>, vector<8x384xf32> -> vector<8x384xf32>
    %83 = vector.broadcast %11 : vector<1x384xf32> to vector<8x384xf32>
    %84 = arith.addf %82, %83 : vector<8x384xf32>
    %85 = vector.extract_strided_slice %81 {offsets = [0, 0], sizes = [8, 128], strides = [1, 1]} : vector<8x384xf32> to vector<8x128xf32>
    %86 = vector.extract_strided_slice %84 {offsets = [0, 0], sizes = [8, 128], strides = [1, 1]} : vector<8x384xf32> to vector<8x128xf32>
    %87 = arith.addf %85, %86 : vector<8x128xf32>
    %88 = arith.negf %87 : vector<8x128xf32>
    %89 = math.exp %88 : vector<8x128xf32>
    %cst_25 = arith.constant 1.000000e+00 : f32
    %90 = vector.broadcast %cst_25 : f32 to vector<8x128xf32>
    %91 = arith.addf %90, %89 : vector<8x128xf32>
    %92 = arith.divf %90, %91 : vector<8x128xf32>
    %93 = vector.extract_strided_slice %81 {offsets = [0, 128], sizes = [8, 128], strides = [1, 1]} : vector<8x384xf32> to vector<8x128xf32>
    %94 = vector.extract_strided_slice %84 {offsets = [0, 128], sizes = [8, 128], strides = [1, 1]} : vector<8x384xf32> to vector<8x128xf32>
    %95 = arith.addf %93, %94 : vector<8x128xf32>
    %96 = arith.negf %95 : vector<8x128xf32>
    %97 = math.exp %96 : vector<8x128xf32>
    %cst_26 = arith.constant 1.000000e+00 : f32
    %98 = vector.broadcast %cst_26 : f32 to vector<8x128xf32>
    %99 = arith.addf %98, %97 : vector<8x128xf32>
    %100 = arith.divf %98, %99 : vector<8x128xf32>
    %101 = vector.extract_strided_slice %81 {offsets = [0, 256], sizes = [8, 128], strides = [1, 1]} : vector<8x384xf32> to vector<8x128xf32>
    %102 = vector.extract_strided_slice %84 {offsets = [0, 256], sizes = [8, 128], strides = [1, 1]} : vector<8x384xf32> to vector<8x128xf32>
    %103 = arith.mulf %92, %102 : vector<8x128xf32>
    %104 = arith.addf %101, %103 : vector<8x128xf32>
    %105 = math.tanh %104 : vector<8x128xf32>
    %cst_27 = arith.constant 1.000000e+00 : f32
    %106 = vector.broadcast %cst_27 : f32 to vector<8x128xf32>
    %107 = arith.subf %106, %100 : vector<8x128xf32>
    %108 = arith.mulf %107, %105 : vector<8x128xf32>
    %109 = arith.mulf %100, %80 : vector<8x128xf32>
    %110 = arith.addf %108, %109 : vector<8x128xf32>
    %c3_i32_28 = arith.constant 3 : i32
    %111 = arith.muli %arg1, %c3_i32_28 : i32
    %c2_i32 = arith.constant 2 : i32
    %112 = arith.addi %111, %c2_i32 : i32
    %c8_i32_29 = arith.constant 8 : i32
    %113 = arith.cmpi slt, %112, %c8_i32_29 : i32
    %114 = arith.select %113, %110, %80 : vector<8x128xf32>
    %c0_30 = arith.constant 0 : index
    %c0_31 = arith.constant 0 : index
    %115 = vector.load %arg12[%c0_30, %c0_31] : memref<8x128xf32, #tpu.memory_space<vmem>>, vector<8x128xf32>
    tpu.vector_store %arg12[%c0_30, %c0_31], %114 {strides = array<i32>} : memref<8x128xf32, #tpu.memory_space<vmem>>, vector<8x128xf32>,
    %c0_32 = arith.constant 0 : index
    %c0_33 = arith.constant 0 : index
    %116 = vector.load %arg11[%c0_32, %c0_33] : memref<8x128xf32, #tpu.memory_space<vmem>>, vector<8x128xf32>
    tpu.vector_store %arg11[%c0_32, %c0_33], %114 {strides = array<i32>} : memref<8x128xf32, #tpu.memory_space<vmem>>, vector<8x128xf32>,
    %117 = tpu.concatenate %46, %80, %114 in 0 : vector<8x128xf32>, vector<8x128xf32>, vector<8x128xf32> -> vector<24x128xf32>
    %c0_34 = arith.constant 0 : index
    %c0_35 = arith.constant 0 : index
    %118 = vector.load %arg8[%c0_34, %c0_35] : memref<128x128xf32, #tpu.memory_space<vmem>>, vector<128x128xf32>
    %cst_36 = arith.constant dense<0.000000e+00> : vector<24x128xf32>
    %119 = tpu.matmul %117, %118, %cst_36 {dimension_numbers = #tpu.dot_dimension_numbers<[1], [0], [0], [1], [0, 0, 1, 1], [], []>} : vector<24x128xf32>, vector<128x128xf32>, vector<24x128xf32> -> vector<24x128xf32>
    %c0_37 = arith.constant 0 : index
    %c0_38 = arith.constant 0 : index
    %120 = vector.load %arg9[%c0_37, %c0_38] : memref<1x128xf32, #tpu.memory_space<vmem>>, vector<1x128xf32>
    %121 = vector.broadcast %120 : vector<1x128xf32> to vector<24x128xf32>
    %122 = arith.addf %119, %121 : vector<24x128xf32>
    %123 = vector.shape_cast %122 : vector<24x128xf32> to vector<3x8x128xf32>
    %c0_39 = arith.constant 0 : index
    %c0_40 = arith.constant 0 : index
    %c0_41 = arith.constant 0 : index
    %124 = vector.load %arg10[%c0_39, %c0_40, %c0_41] : memref<3x8x128xf32, #tpu.memory_space<vmem>>, vector<3x8x128xf32>
    tpu.vector_store %arg10[%c0_39, %c0_40, %c0_41], %123 {strides = array<i32>} : memref<3x8x128xf32, #tpu.memory_space<vmem>>, vector<3x8x128xf32>,
    return
  }
  func.func @transform_0(%arg0: i32, %arg1: i32) -> (i32, i32, i32) {
    %c0_i32 = arith.constant 0 : i32
    %c0_i32_0 = arith.constant 0 : i32
    return %arg1, %arg0, %c0_i32 : i32, i32, i32
  }
  func.func @transform_1(%arg0: i32, %arg1: i32) -> (i32, i32) {
    %c0_i32 = arith.constant 0 : i32
    %c0_i32_0 = arith.constant 0 : i32
    return %arg0, %c0_i32 : i32, i32
  }
  func.func @transform_2(%arg0: i32, %arg1: i32) -> (i32, i32) {
    %c0_i32 = arith.constant 0 : i32
    %c0_i32_0 = arith.constant 0 : i32
    %c0_i32_1 = arith.constant 0 : i32
    return %c0_i32, %c0_i32_0 : i32, i32
  }
  func.func @transform_3(%arg0: i32, %arg1: i32) -> (i32, i32) {
    %c0_i32 = arith.constant 0 : i32
    %c0_i32_0 = arith.constant 0 : i32
    %c0_i32_1 = arith.constant 0 : i32
    return %c0_i32, %c0_i32_0 : i32, i32
  }
  func.func @transform_4(%arg0: i32, %arg1: i32) -> (i32, i32) {
    %c0_i32 = arith.constant 0 : i32
    %c0_i32_0 = arith.constant 0 : i32
    %c0_i32_1 = arith.constant 0 : i32
    return %c0_i32, %c0_i32_0 : i32, i32
  }
  func.func @transform_5(%arg0: i32, %arg1: i32) -> (i32, i32) {
    %c0_i32 = arith.constant 0 : i32
    %c0_i32_0 = arith.constant 0 : i32
    %c0_i32_1 = arith.constant 0 : i32
    return %c0_i32, %c0_i32_0 : i32, i32
  }
  func.func @transform_6(%arg0: i32, %arg1: i32) -> (i32, i32) {
    %c0_i32 = arith.constant 0 : i32
    %c0_i32_0 = arith.constant 0 : i32
    %c0_i32_1 = arith.constant 0 : i32
    return %c0_i32, %c0_i32_0 : i32, i32
  }
  func.func @transform_7(%arg0: i32, %arg1: i32) -> (i32, i32) {
    %c0_i32 = arith.constant 0 : i32
    %c0_i32_0 = arith.constant 0 : i32
    %c0_i32_1 = arith.constant 0 : i32
    return %c0_i32, %c0_i32_0 : i32, i32
  }
  func.func @transform_8(%arg0: i32, %arg1: i32) -> (i32, i32, i32) {
    %c0_i32 = arith.constant 0 : i32
    %c0_i32_0 = arith.constant 0 : i32
    return %arg1, %arg0, %c0_i32 : i32, i32, i32
  }
  func.func @transform_9(%arg0: i32, %arg1: i32) -> (i32, i32) {
    %c0_i32 = arith.constant 0 : i32
    %c0_i32_0 = arith.constant 0 : i32
    return %arg0, %c0_i32 : i32, i32
  }
}

</mosaic_0001>

<bundles_post_ra>
// kernel: tpu_custom_call.1
= control target key start
LH: loop header
LB: loop body
LE: loop exit
PB: predicated region body
PF: predicated region fallthrough
CT: control target
= control target key end

     0   :  { %s3033_s0 = inlined_call_operand.hbm [shape: f32[9,8,16], index: 0, kind: input, shape index: {}]   ;;  %s3034_s1 = inlined_call_operand.hbm [shape: f32[8,128], index: 1, kind: input, shape index: {}]   ;;  %s3035_s2 = inlined_call_operand.hbm [shape: f32[16,384], index: 2, kind: input, shape index: {}]   ;;  %s3036_s3 = inlined_call_operand.hbm [shape: f32[128,384], index: 3, kind: input, shape index: {}]   ;;  %s3037_s4 = inlined_call_operand.vmem [shape: f32[1,384], index: 4, kind: input, shape index: {}]   ;;  %s3038_s5 = inlined_call_operand.vmem [shape: f32[1,384], index: 5, kind: input, shape index: {}]   ;;  %s3039_s6 = inlined_call_operand.hbm [shape: f32[128,128], index: 6, kind: input, shape index: {}]   ;;  %s3040_s7 = inlined_call_operand.vmem [shape: f32[1,128], index: 7, kind: input, shape index: {}]   ;;  %s3041_s8 = inlined_call_operand.hbm [shape: f32[9,8,128], index: 8, kind: output, shape index: {0}]   ;;  %s3042_s9 = inlined_call_operand.hbm [shape: f32[8,128], index: 9, kind: output, shape index: {1}]  }
   0x1   :  { %3053 = sst [smem:[#allocation22_spill]] %s3034_s1 }
   0x2   :  { %3054 = sst [smem:[#allocation23_spill]] %s3036_s3 }
   0x3   :  { %3055 = sst [smem:[#allocation24_spill]] %s3041_s8 }
   0x4   :  { %3056 = sst [smem:[#allocation25_spill]] %s3042_s9 }
   0x5   :  { %15 = vsyncpa [#allocation4], 0 }
   0x6   :  { %17 = vsyncpa [#allocation4 + $0x1], 0 }
   0x7   :  { %18 = vsyncpa [#allocation7], 0 }
   0x8   :  { %19 = vsyncpa [#allocation10], 0 }
   0x9   :  { %20 = vsyncpa [#allocation5], 0 }
   0xa   :  { %22 = vsyncpa [#allocation5 + $0x1], 0 }
   0xb   :  { %23 = vsyncpa [#allocation14], 0  ;;  %s2453_s30 = smov 0   ;;  %s2455_s10 = smov 0  }
   0xc   :  { %s2457_s11 = smov 0   ;;  %s2459_s12 = smov 0  }
   0xd   :  { %s2461_s13 = smov 0   ;;  %s2463_s14 = smov 0  }
   0xe LB: > { %3057 = sst [smem:[#allocation20_spill]] %s2365_s30  ;;  %s1486_s15 = sadd.s32 4294967295, %s2385_s14   ;;  %s2385_s14 = sphi %s2463_s14, %s29_s14   ;;  %s2381_s13 = sphi %s2461_s13, %s3085_s13   ;;  %s2377_s12 = sphi %s2459_s12, %s3084_s12   ;;  %s2373_s11 = sphi %s2457_s11, %s3083_s11   ;;  %s2369_s10 = sphi %s2455_s10, %s3082_s10   ;;  %s2365_s30 = sphi %s2453_s30, %s3081_s30  }
   0xf   : > { %s1487_s16 = sadd.s32 4294967294, %s2385_s14   ;;  %p63_p0 = scmp.ne.s32.totalorder %s2369_s10, %s2365_s30 }
  0x10   : > { %p2487_p1 = scmp.eq.s32.totalorder %s1486_s15, 0  ;;  %p2491_p2 = scmp.eq.s32.totalorder %s1486_s15, 2 }
  0x11   : > { %p247_p3 = scmp.eq.s32.totalorder %s1487_s16, 2  ;;  %p1488_p5 = scmp.ge.s32.totalorder %s2385_s14, 1 }
  0x12   : > { %s3058_s17 = scalar_select %p2487_p1, 1, 0 }
  0x13   : > { %s3059_s18 = scalar_select %p2491_p2, 1, 0 }
  0x14   : > { %p2497_p4 = por %p2487_p1, %p63_p0  ;;  %p2502_p6 = por %p247_p3, %p63_p0 }
  0x15   : > { %p280_p7 = scmp.lt.s32.totalorder %s2385_s14, 4  ;;  %s2387_s22 = smov [#allocation6]  }
  0x16   : > { %s3060_s19 = scalar_select %p2497_p4, 1, 0 }
  0x17   : > { %s3061_s20 = scalar_select %p2502_p6, 1, 0 }
  0x18   : > { %p2507_p8 = pnand %p1488_p5, %p280_p7  ;;  %s295_s23 = sshll.u32 %s2387_s22, 4  ;;  %s296_s23 = int_to_ptr.vmem [resolvable:$true] %s295_s23 }
  0x19   : > { %3062 = sst [smem:[#allocation21_spill]] %s3061_s20  ;;  %s2388_s25 = smov [#allocation9]  }
  0x1a   : > { %s3063_s21 = scalar_select %p2507_p8, 1, 0 }
  0x1b   : > { %p1998_p9 = pneg %p2507_p8  ;;  %s318_s26 = sshll.u32 %s2388_s25, 4  ;;  %s2519_s26 = int_to_ptr.vmem [resolvable:$true] %s318_s26 }
  0x1c   : > { %s2389_s27 = smov [#allocation8]   ;;  %s3065_s1 = sld [smem:[#allocation22_spill]] }
  0x1d   : > { %p2515_p10 = pnand %p1998_p9, %p2487_p1  ;;  %s2521_s28 = sshll.u32 %s2389_s27, 4  ;;  %s306_s28 = int_to_ptr.vmem [resolvable:$true] %s2521_s28 }
  0x1f   : > { %p2531_p12 = pneg %p2515_p10 }
  0x22   : > { %s2123_s16 = scalar_lea.hbm %s3065_s1, 128 }
  0x23   : > { %p2124_p11 = scmp.ne.s32.totalorder %s3065_s1, %s2123_s16  ;;  %p2130_p3 = scmp.lt.u32.totalorder %s2123_s16, %s3065_s1 }
  0x25   : > { %p2126_p13 = pnand %p2531_p12, %p2124_p11 }
  0x27   : > { %p2127_p0 = pneg %p2126_p13 }
  0x29   : > { %p2132_p5 = pnand %p2130_p3, %p2127_p0 }
  0x2b   : > { %2135 = shalt.err (!%p2132_p5)
}
  0x2c   : > { %s2136_s29 = scalar_lea.vmem %s296_s23, 128  ;;  %p2144_p1 = scmp.lt.s32.totalorder %s296_s23, %s296_s23 }
  0x2d   : > { %p2137_p7 = scmp.ne.s32.totalorder %s296_s23, %s2136_s29  ;;  %p2145_p4 = scmp.lt.s32.totalorder %s2136_s29, %s2136_s29 }
  0x2f   : > { %p2139_p9 = pnand %p2137_p7, %p2531_p12  ;;  %p2146_p8 = por %p2145_p4, %p2144_p1 }
  0x31   : > { %p2140_p6 = pneg %p2139_p9 }
  0x33   : > { %p2147_p2 = pnand %p2146_p8, %p2140_p6 }
  0x35   : > { %2150 = shalt.err (!%p2147_p2)
}
  0x36   : > { %2001 = dma.hbm_to_vmem [thread:$0]  (!%p2515_p10), %s3065_s1, 128, %s296_s23, [#allocation7]  }
  0x37   : > { %s3067_s3 = sld [smem:[#allocation23_spill]] }
  0x3d   : > { %s2151_s25 = scalar_lea.hbm %s3067_s3, 6144 }
  0x3e   : > { %p2152_p11 = scmp.ne.s32.totalorder %s3067_s3, %s2151_s25  ;;  %p2158_p2 = scmp.lt.u32.totalorder %s2151_s25, %s3067_s3 }
  0x40   : > { %p2154_p13 = pnand %p2152_p11, %p2531_p12 }
  0x42   : > { %p2155_p1 = pneg %p2154_p13 }
  0x44   : > { %p2160_p4 = pnand %p2158_p2, %p2155_p1 }
  0x46   : > { %2163 = shalt.err (!%p2160_p4)
}
  0x47   : > { %s2164_s23 = scalar_lea.vmem %s2519_s26, 6144  ;;  %p2172_p3 = scmp.lt.s32.totalorder %s2519_s26, %s2519_s26 }
  0x48   : > { %p2165_p6 = scmp.ne.s32.totalorder %s2519_s26, %s2164_s23  ;;  %p2173_p5 = scmp.lt.s32.totalorder %s2164_s23, %s2164_s23 }
  0x4a   : > { %p2167_p8 = pnand %p2165_p6, %p2531_p12  ;;  %p2174_p7 = por %p2173_p5, %p2172_p3 }
  0x4c   : > { %p2168_p0 = pneg %p2167_p8 }
  0x4e   : > { %p2175_p9 = pnand %p2174_p7, %p2168_p0 }
  0x50   : > { %2178 = shalt.err (!%p2175_p9)
}
  0x51   : > { %s2390_s8 = smov 384   ;;  %s2391_s9 = smov 24  }
  0x52   : > { %2007 = dma.hbm_to_vmem [thread:$0]  (!%p2515_p10), %s3067_s3, 6144, %s2519_s26, [#allocation10], %s2390_s8, %s2390_s8, %s2391_s9  }
  0x53   : > { %s2179_s25 = scalar_lea.hbm %s3035_s2, 768 }
  0x54   : > { %p2180_p11 = scmp.ne.s32.totalorder %s3035_s2, %s2179_s25  ;;  %p2186_p2 = scmp.lt.u32.totalorder %s2179_s25, %s3035_s2 }
  0x56   : > { %p2182_p13 = pnand %p2180_p11, %p2531_p12 }
  0x58   : > { %p2183_p1 = pneg %p2182_p13 }
  0x5a   : > { %p2188_p4 = pnand %p2186_p2, %p2183_p1 }
  0x5c   : > { %2191 = shalt.err (!%p2188_p4)
}
  0x5d   : > { %s2192_s20 = scalar_lea.vmem %s306_s28, 768  ;;  %p2200_p3 = scmp.lt.s32.totalorder %s306_s28, %s306_s28 }
  0x5e   : > { %p2193_p6 = scmp.ne.s32.totalorder %s306_s28, %s2192_s20  ;;  %p2201_p5 = scmp.lt.s32.totalorder %s2192_s20, %s2192_s20 }
  0x60   : > { %p2195_p8 = pnand %p2193_p6, %p2531_p12  ;;  %p2202_p7 = por %p2201_p5, %p2200_p3 }
  0x62   : > { %p2196_p0 = pneg %p2195_p8 }
  0x64   : > { %p2203_p9 = pnand %p2202_p7, %p2196_p0 }
  0x66   : > { %2206 = shalt.err (!%p2203_p9)
}
  0x67   : > { %2004 = dma.hbm_to_vmem [thread:$0]  (!%p2515_p10), %s3035_s2, 768, %s306_s28, [#allocation7], %s2390_s8, %s2390_s8, %s2391_s9  }
  0x68   : > { %s2392_s1 = smov [#allocation11]   ;;  %s2207_s27 = scalar_lea.hbm %s3039_s6, 2048 }
  0x69   : > { %s337_s16 = sshll.u32 %s2392_s1, 4  ;;  %p2208_p11 = scmp.ne.s32.totalorder %s3039_s6, %s2207_s27  ;;  %s338_s16 = int_to_ptr.vmem [resolvable:$true] %s337_s16 }
  0x6a   : > { %p2214_p2 = scmp.lt.u32.totalorder %s2207_s27, %s3039_s6 }
  0x6b   : > { %p2210_p13 = pnand %p2208_p11, %p2531_p12 }
  0x6d   : > { %p2211_p1 = pneg %p2210_p13 }
  0x6f   : > { %p2216_p4 = pnand %p2214_p2, %p2211_p1 }
  0x71   : > { %2219 = shalt.err (!%p2216_p4)
}
  0x72   : > { %s2220_s28 = scalar_lea.vmem %s338_s16, 2048  ;;  %p2228_p3 = scmp.lt.s32.totalorder %s338_s16, %s338_s16 }
  0x73   : > { %p2221_p6 = scmp.ne.s32.totalorder %s338_s16, %s2220_s28  ;;  %p2229_p5 = scmp.lt.s32.totalorder %s2220_s28, %s2220_s28 }
  0x75   : > { %p2223_p8 = pnand %p2221_p6, %p2531_p12  ;;  %p2230_p7 = por %p2229_p5, %p2228_p3 }
  0x77   : > { %p2224_p0 = pneg %p2223_p8 }
  0x79   : > { %p2231_p9 = pnand %p2230_p7, %p2224_p0 }
  0x7b   : > { %2234 = shalt.err (!%p2231_p9)
}
  0x7c   : > { %s3052_s8 = smov 128   ;;  %s2394_s3 = smov 8  }
  0x7d   : > { %2010 = dma.hbm_to_vmem [thread:$0]  (!%p2515_p10), %s3039_s6, 2048, %s338_s16, [#allocation10], %s3052_s8, %s3052_s8, %s2394_s3  }
  0x7e   : > { %s38_s26 = sadd.s32 1, %s2381_s13  ;;  %s50_s15 = sadd.s32 1, %s2373_s11 }
  0x7f   : > { %p39_p12 = scmp.ge.s32.totalorder %s38_s26, 3  ;;  %p57_p11 = scmp.ne.s32.totalorder %s2373_s11, %s2369_s10 }
  0x80   : > { %p58_p13 = scmp.eq.s32.totalorder %s2385_s14, 0  ;;  %p2023_p1 = scmp.lt.s32.totalorder %s2385_s14, 3 }
  0x81   : > { %s3087_s26 = smov (%p39_p12, %s38_s26), 0  ;;  %p3068_p4 = scmp.ne.s32.totalorder %s3059_s18, 0 }
  0x82   : > { %p59_p2 = por %p58_p13, %p57_p11  ;;  %s45_s1 = ssub.s32 %s2381_s13, %s3087_s26 }
  0x83   : > { %p2620_p6 = por %p3068_p4, %p57_p11  ;;  %s354_s22 = sand.u32 1, %s2373_s11  }
  0x84   : > { %p48_p8 = scmp.eq.s32.totalorder %s45_s1, 0  ;;  %s1972_s16 = smul.u32 24, %s354_s22 }
  0x85   : > { %p2627_p10 = pnand %p2023_p1, %p59_p2  ;;  %s1519_s29 = smul.u32 384, %s2381_s13 }
  0x86   : > { %s2632_s27 = scalar_select %p48_p8, %s2373_s11, %s50_s15  }
  0x87   : > { %s358_s23 = scalar_lea.vmem [#allocation3], %s1972_s16  ;;  %s2638_s9 = scalar_lea.hbm %s3033_s0, %s1519_s29 }
  0x88   : > { %s366_s20 = sshll.u32 %s358_s23, 4  ;;  %s2642_s1 = scalar_lea.sflag [#allocation4], %s354_s22  ;;  %s2640_s20 = int_to_ptr.vmem [resolvable:$true] %s366_s20 }
  0x89   : > { %s2235_s8 = scalar_lea.hbm %s2638_s9, 384  ;;  %p2237_p3 = pneg %p2627_p10 }
  0x8a   : > { %p2236_p0 = scmp.ne.s32.totalorder %s2638_s9, %s2235_s8  ;;  %s2240_s29 = scalar_lea.hbm %s3033_s0, 1152 }
  0x8b   : > { %p2241_p9 = scmp.lt.u32.totalorder %s2638_s9, %s3033_s0  ;;  %p2242_p12 = scmp.lt.u32.totalorder %s2240_s29, %s2235_s8 }
  0x8c   : > { %p2238_p5 = pnand %p2237_p3, %p2236_p0  ;;  %p2244_p13 = scmp.lt.u32.totalorder %s2235_s8, %s2638_s9 }
  0x8d   : > { %p2243_p11 = por %p2242_p12, %p2241_p9 }
  0x8e   : > { %p2239_p7 = pneg %p2238_p5 }
  0x8f   : > { %p2245_p1 = por %p2244_p13, %p2243_p11 }
  0x91   : > { %p2246_p2 = pnand %p2245_p1, %p2239_p7 }
  0x93   : > { %2249 = shalt.err (!%p2246_p2)
}
  0x94   : > { %s2250_s22 = scalar_lea.vmem %s2640_s20, 384  ;;  %s2395_s30 = smov [#allocation3]  }
  0x95   : > { %p2251_p4 = scmp.ne.s32.totalorder %s2640_s20, %s2250_s22  ;;  %s2255_s15 = sshll.u32 %s2395_s30, 4  ;;  %s2256_s15 = int_to_ptr.vmem [resolvable:$false] %s2255_s15 }
  0x96   : > { %s2257_s16 = scalar_lea.vmem %s2256_s15, 768  ;;  %p2258_p5 = scmp.lt.s32.totalorder %s2640_s20, %s2256_s15 }
  0x97   : > { %p2253_p8 = pnand %p2251_p4, %p2237_p3  ;;  %p2259_p9 = scmp.lt.s32.totalorder %s2257_s16, %s2250_s22 }
  0x99   : > { %p2254_p0 = pneg %p2253_p8  ;;  %p2260_p12 = por %p2259_p9, %p2258_p5 }
  0x9b   : > { %p2261_p11 = pnand %p2260_p12, %p2254_p0 }
  0x9d   : > { %2264 = shalt.err (!%p2261_p11)
}
  0x9e   : > { %s3071_s8 = smov 128   ;;  %p3072_p3 = scmp.ne.s32.totalorder %s3063_s21, 0 }
  0x9f   : > { %2014 = dma.hbm_to_vmem [thread:$0]  (!%p2627_p10), %s2638_s9, 384, %s2640_s20, %s2642_s1, %s3071_s8, %s3071_s8, %s2394_s3  }
  0xa0   : > { %378 = sbr.rel (%p3072_p3) target bundleno = 1234 (0x4d2), region = 52  ;;  %s2676_s29 = sand.u32 (!%p3072_p3), 1, %s2369_s10  }
  0xa1   : > { %s1973_s23 = smul.u32 (!%p3072_p3), 24, %s2676_s29  ;;  %s381_s28 = scalar_lea.sflag (!%p3072_p3), [#allocation4], %s2676_s29 }
  0xa2   : > { %p3073_p7 = scmp.ne.s32.totalorder (!%p3072_p3), %s3060_s19, 0 }
  0xa3   : > { %s2680_s22 = scalar_lea.vmem (!%p3072_p3), [#allocation3], %s1973_s23 }
  0xa7   : > { %2344 = dma.done.wait (%p3073_p7), %s381_s28, 384  }
  0xa8   : > { %2346 = vsyncadd (%p3073_p7), %s381_s28, 4294966912  ;;  %p3074_p10 = scmp.ne.s32.totalorder %s3058_s17, 0 }
  0xaa   : > { %2348 = dma.done.wait (%p3074_p10), [#allocation7], 896  }
  0xab   : > { %2350 = vsyncadd (%p3074_p10), [#allocation7], 4294966400 }
  0xac   : > { %2352 = dma.done.wait (%p3074_p10), [#allocation10], 8192  }
  0xad   : > { %2354 = vsyncadd (%p3074_p10), [#allocation10], 4294959104  ;;  %s2694_s21 = scalar_lea.vmem [#allocation12], %s1973_s23  ;;  %p1500_p13 = scmp.ne.s32.totalorder %s2377_s12, 0 }
  0xae   : > { %v441_v0 = vld [vmem:[#allocation6] sm:$0xff] (!%p1500_p13) }
  0xaf   : > { %440 = sbr.rel (%p1500_p13) target bundleno = 182 (0xb6), region = 76  ;;  %442 = vst [vmem:[#allocation2] sm:$0xff] (!%p1500_p13), %v441_v0 }
  0xb6 PF: > { %v643_v1 = vld [vmem:[#allocation9 + $0x8] sm:$0xff]  ;;  %v646_v2 = vld [vmem:[#allocation9 + $0x20] sm:$0xff]  ;;  %v645_v5 = vld [vmem:[#allocation9 + $0x18] sm:$0xff]  ;;  %v2396_v8 = vmov 0.0   ;;  %vm469_vm0 = vcmask 130048   ;;  %v2397_v38 = vmov 0.0|0.0  }
  0xb7   : > { %v642_v3 = vld [vmem:[#allocation9] sm:$0xff]  ;;  %v2697_v4 = vpack.c.bf16 %v646_v2, %v643_v1  ;;  %v649_v6 = vld [vmem:[#allocation9 + $0x38] sm:$0xff]  ;;  %v652_v7 = vld [vmem:[#allocation9 + $0x50] sm:$0xff]  ;;  %543 = vmatprep.mubr.f32.mxu0 %v2396_v8  ;;  %772 = vmatprep.mubr.f32.mxu1 %v2396_v8  ;;  %vm2398_vm1 = vmmov 0   ;;  %s2866_s20 = smul.u32 3, %s2377_s12  ;;  %s2399_s28 = smov [#allocation13]  }
  0xb8   : > { %v2701_v9 = vpack.c.bf16 %v645_v5, %v642_v3  ;;  %v2703_v10 = vpack.c.bf16 %v652_v7, %v649_v6  ;;  %v648_v11 = vld [vmem:[#allocation9 + $0x30] sm:$0xff]  ;;  %v651_v12 = vld [vmem:[#allocation9 + $0x48] sm:$0xff]  ;;  %v658_v14 = vld [vmem:[#allocation9 + $0x80] sm:$0xff]  ;;  %p3075_p0 = scmp.ne.s32.totalorder %s3059_s18, 0 }
  0xb9   : > { %v655_v13 = vld [vmem:[#allocation9 + $0x68] sm:$0xff]  ;;  %1763 = vmatprep.subr.bf16.mxu1 %v2697_v4  ;;  %v2707_v15 = vpack.c.bf16 %v651_v12, %v648_v11  ;;  %v654_v17 = vld [vmem:[#allocation9 + $0x60] sm:$0xff]  ;;  %v657_v18 = vld [vmem:[#allocation9 + $0x78] sm:$0xff]  ;;  %p871_p1 = scmp.lt.s32.totalorder %s2866_s20, 8  ;;  %s1038_s1 = sadd.s32 1, %s2866_s20 }
  0xba   : > { %1765 = vmatpush1.bf16.msra.mxu1 %v2701_v9  ;;  %v2710_v16 = vpack.c.bf16 %v658_v14, %v655_v13  ;;  %v661_v19 = vld [vmem:[#allocation9 + $0x98] sm:$0xff]  ;;  %v664_v20 = vld [vmem:[#allocation9 + $0xb0] sm:$0xff]  ;;  %v2713_v21 = vpack.c.bf16 %v657_v18, %v654_v17  ;;  %v663_v26 = vld [vmem:[#allocation9 + $0xa8] sm:$0xff]  ;;  %p1039_p2 = scmp.lt.s32.totalorder %s1038_s1, 8  ;;  %s1206_s8 = sadd.s32 2, %s2866_s20 }
  0xbb   : > { %1767 = vmatprep.subr.bf16.mxu1 %v2703_v10  ;;  %v660_v22 = vld [vmem:[#allocation9 + $0x90] sm:$0xff]  ;;  %v447_v23 = vld [vmem:[#allocation8 + $0x8] sm:$0xff]  ;;  %v2716_v25 = vpack.c.bf16 %v664_v20, %v661_v19  ;;  %v449_v29 = vld [vmem:[#allocation8 + $0x18] sm:$0xff]  ;;  %s872_s9 = scalar_select %p871_p1, 1, 0 }
  0xbc   : > { %v450_v24 = vld [vmem:[#allocation8 + $0x20] sm:$0xff]  ;;  %v667_v30 = vld [vmem:[#allocation9 + $0xc8] sm:$0xff]  ;;  %v670_v31 = vld [vmem:[#allocation9 + $0xe0] sm:$0xff]  ;;  %v2719_v33 = vpack.c.bf16 %v663_v26, %v660_v22  ;;  %s1040_s30 = scalar_select %p1039_p2, 1, 0 }
  0xbd   : > { %v1755_v27 = vpack.c.bf16 %v450_v24, %v447_v23  ;;  %v446_v28 = vld [vmem:[#allocation8] sm:$0xff]  ;;  %v2723_v35 = vpack.c.bf16 %v670_v31, %v667_v30  ;;  %v666_v36 = vld [vmem:[#allocation9 + $0xc0] sm:$0xff]  ;;  %v669_v37 = vld [vmem:[#allocation9 + $0xd8] sm:$0xff]  ;;  %p1207_p4 = scmp.lt.s32.totalorder %s1206_s8, 8 }
  0xbe   : > { %1769 = vmatpush1.bf16.msra.mxu1 %v2707_v15  ;;  %v1757_v32 = vpack.c.bf16 %v449_v29, %v446_v28  ;;  %v443_v34 = vld [vmem:[%s2680_s22] sm:$0xff]  ;;  %v2728_v41 = vpack.c.bf16 %v669_v37, %v666_v36  ;;  %v448_v43 = vld [vmem:[#allocation8 + $0x10] sm:$0xff]  ;;  %v675_v45 = vld [vmem:[#allocation9 + $0x108] sm:$0xff] }
  0xbf   : > { %1771 = vmatprep.subr.bf16.mxu1 %v2710_v16  ;;  %1756 = vmatprep.subr.bf16.mxu0 %v1755_v27  ;;  %v673_v39 = vld [vmem:[#allocation9 + $0xf8] sm:$0xff]  ;;  %v676_v40 = vld [vmem:[#allocation9 + $0x110] sm:$0xff]  ;;  %v679_v48 = vld [vmem:[#allocation9 + $0x128] sm:$0xff]  ;;  %s1208_s23 = scalar_select %p1207_p4, 1, 0 }
  0xc0   : > { %1758 = vmatpush1.bf16.msra.mxu0 %v1757_v32  ;;  %v672_v42 = vld [vmem:[#allocation9 + $0xf0] sm:$0xff]  ;;  %v2732_v44 = vpack.c.bf16 %v676_v40, %v673_v39  ;;  %v451_v46 = vld [vmem:[#allocation8 + $0x28] sm:$0xff]  ;;  %v682_v49 = vld [vmem:[#allocation9 + $0x140] sm:$0xff] }
  0xc1   : > { %1759 = vmatprep.subr.bf16.mxu0 %v2397_v38  ;;  %v444_v47 = vld [vmem:[%s2680_s22 + $0x8] sm:$0xff]  ;;  %v1760_v50 = vpack.c.bf16 %v451_v46, %v448_v43  ;;  %v2737_v51 = vpack.c.bf16 %v675_v45, %v672_v42  ;;  %v445_v52 = vld [vmem:[%s2680_s22 + $0x10] sm:$0xff]  ;;  %v2741_v53 = vpack.c.bf16 %v682_v49, %v679_v48  ;;  %v688_v57 = vld [vmem:[#allocation9 + $0x170] sm:$0xff]  ;;  %s1351_s22 = sshll.u32 %s2399_s28, 4  ;;  %s1352_s22 = int_to_ptr.vmem [resolvable:$true] %s1351_s22 }
  0xc2   : > { %1773 = vmatpush1.bf16.msra.mxu1 %v2713_v21  ;;  %v678_v54 = vld [vmem:[#allocation9 + $0x120] sm:$0xff]  ;;  %v681_v55 = vld [vmem:[#allocation9 + $0x138] sm:$0xff]  ;;  %v684_v60 = vld [vmem:[#allocation9 + $0x150] sm:$0xff]  ;;  %s2265_s17 = scalar_lea.vmem %s1352_s22, 128  ;;  %p2272_p12 = scmp.lt.s32.totalorder %s1352_s22, %s1352_s22 }
  0xc3   : > { %1775 = vmatprep.subr.bf16.mxu1 %v2716_v25  ;;  %1501 = vmatmul.mubr.msk.f32.vlgmr.msra.gmra.mrb[0].mxu0 %vm469_vm0, %v443_v34  ;;  %v685_v56 = vld [vmem:[#allocation9 + $0x158] sm:$0xff]  ;;  %v2747_v58 = vpack.c.bf16 %v681_v55, %v678_v54  ;;  %v687_v61 = vld [vmem:[#allocation9 + $0x168] sm:$0xff]  ;;  %v644_v63 = vld [vmem:[#allocation9 + $0x10] sm:$0xff]  ;;  %p2266_p8 = scmp.ne.s32.totalorder %s1352_s22, %s2265_s17  ;;  %p2273_p11 = scmp.lt.s32.totalorder %s2265_s17, %s2265_s17 }
  0xc4   : > { %549 = vmatprep.mubr.f32.mxu0 %v2396_v8  ;;  %1761 = vmatpush3.bf16.msra.mxu0 %v1760_v50  ;;  %v2752_v59 = vpack.c.bf16 %v688_v57, %v685_v56  ;;  %v2756_v62 = vpack.c.bf16 %v687_v61, %v684_v60  ;;  %v647_v0 = vld [vmem:[#allocation9 + $0x28] sm:$0xff]  ;;  %v2765_v1 = vld [vmem:[#allocation2] sm:$0xff]  ;;  %v650_v3 = vld [vmem:[#allocation9 + $0x40] sm:$0xff] }
  0xc5   : > { %1819 = vmatprep.subr.bf16.mxu0 %v2697_v4  ;;  %v2767_v2 = vpack.c.bf16 %v647_v0, %v644_v63  ;;  %v653_v5 = vld [vmem:[#allocation9 + $0x58] sm:$0xff]  ;;  %v656_v7 = vld [vmem:[#allocation9 + $0x70] sm:$0xff]  ;;  %v659_v11 = vld [vmem:[#allocation9 + $0x88] sm:$0xff]  ;;  %p2267_p5 = pnand %p2266_p8, %p3075_p0  ;;  %p2274_p3 = por %p2273_p11, %p2272_p12 }
  0xc6   : > { %1777 = vmatpush1.bf16.msra.mxu1 %v2719_v33  ;;  %v2777_v6 = vpack.c.bf16 %v653_v5, %v650_v3  ;;  %v2786_v12 = vpack.c.bf16 %v659_v11, %v656_v7  ;;  %v662_v13 = vld [vmem:[#allocation9 + $0xa0] sm:$0xff]  ;;  %v665_v14 = vld [vmem:[#allocation9 + $0xb8] sm:$0xff]  ;;  %v668_v18 = vld [vmem:[#allocation9 + $0xd0] sm:$0xff] }
  0xc7   : > { %1779 = vmatprep.subr.bf16.mxu1 %v2723_v35  ;;  %1502 = vmatmul.mubr.msk.f32.gmra.mrb[2].mxu0 %vm469_vm0, %v444_v47  ;;  %v2792_v17 = vpack.c.bf16 %v665_v14, %v662_v13  ;;  %v671_v19 = vld [vmem:[#allocation9 + $0xe8] sm:$0xff]  ;;  %v674_v22 = vld [vmem:[#allocation9 + $0x100] sm:$0xff]  ;;  %v677_v23 = vld [vmem:[#allocation9 + $0x118] sm:$0xff]  ;;  %p2268_p9 = pneg %p2267_p5 }
  0xc8   : > { %555 = vmatprep.mubr.f32.mxu0 %v2396_v8  ;;  %v2798_v20 = vpack.c.bf16 %v671_v19, %v668_v18  ;;  %v2804_v24 = vpack.c.bf16 %v677_v23, %v674_v22  ;;  %v680_v26 = vld [vmem:[#allocation9 + $0x130] sm:$0xff]  ;;  %v683_v27 = vld [vmem:[#allocation9 + $0x148] sm:$0xff]  ;;  %v686_v29 = vld [vmem:[#allocation9 + $0x160] sm:$0xff] }
  0xc9   : > { %v2810_v28 = vpack.c.bf16 %v683_v27, %v680_v26  ;;  %v689_v30 = vld [vmem:[#allocation9 + $0x178] sm:$0xff]  ;;  %v452_v39 = vld [vmem:[%s3037_s4] sm:$0x7]  ;;  %p2275_p7 = pnand %p2274_p3, %p2268_p9 }
  0xca   : > { %1781 = vmatpush1.bf16.msra.mxu1 %v2728_v41  ;;  %v2816_v31 = vpack.c.bf16 %v689_v30, %v686_v29  ;;  %v690_v45 = vld [vmem:[%s3038_s5] sm:$0x7] }
  0xcb   : > { %1783 = vmatprep.subr.bf16.mxu1 %v2732_v44  ;;  %1503 = vmatmul.mubr.msk.f32.gmra.mrb[4].mxu0 %vm469_vm0, %v445_v52 }
  0xcc   : > { %1600 = vmatprep.mubr.msk.f32.mxu0 %vm2398_vm1, %v2396_v8 }
  0xce   : > { %1785 = vmatpush1.bf16.msra.mxu1 %v2737_v51 }
  0xcf   : > { %1787 = vmatprep.subr.bf16.mxu1 %v2741_v53  ;;  %1601 = vmatmul.mubr.msk.f32.vlgmr.msra.gmra.mrb[6].mxu0 %vm469_vm0, %v443_v34 }
  0xd0   : > { %1821 = vmatpush1.bf16.msra.mxu0 %v2701_v9  ;;  %1603 = vmatprep.mubr.msk.f32.mxu0 %vm2398_vm1, %v2396_v8 }
  0xd1   : > { %1823 = vmatprep.subr.bf16.mxu0 %v2703_v10 }
  0xd2   : > { %1789 = vmatpush1.bf16.msra.mxu1 %v2747_v58 }
  0xd3   : > { %1791 = vmatprep.subr.bf16.mxu1 %v2752_v59  ;;  %1604 = vmatmul.mubr.msk.f32.gmra.mrb[8].mxu0 %vm469_vm0, %v444_v47 }
  0xd4   : > { %1825 = vmatpush1.bf16.msra.mxu0 %v2707_v15  ;;  %1606 = vmatprep.mubr.msk.f32.mxu0 %vm2398_vm1, %v2396_v8 }
  0xd5   : > { %1827 = vmatprep.subr.bf16.mxu0 %v2710_v16 }
  0xd6   : > { %1793 = vmatpush1.bf16.msra.mxu1 %v2756_v62 }
  0xd7   : > { %1794 = vmatprep.subr.bf16.mxu1 %v2397_v38  ;;  %1607 = vmatmul.mubr.msk.f32.gmra.mrb[10].mxu0 %vm469_vm0, %v445_v52 }
  0xd8   : > { %1829 = vmatpush1.bf16.msra.mxu0 %v2713_v21  ;;  %940 = vmatprep.mubr.f32.mxu0 %v2396_v8 }
  0xd9   : > { %773 = vmatmul.mubr.f32.vlgmr.msra.gmra.mrb[0].mxu1 %v2765_v1  ;;  %1831 = vmatprep.subr.bf16.mxu0 %v2716_v25 }
  0xda   : > { %1796 = vmatpush3.bf16.msra.mxu1 %v2767_v2  ;;  %1641 = vmatprep.mubr.msk.f32.mxu1 %vm2398_vm1, %v2396_v8 }
  0xdb   : > { %1797 = vmatprep.subr.bf16.mxu1 %v2397_v38 }
  0xdc   : > { %1833 = vmatpush1.bf16.msra.mxu0 %v2719_v33 }
  0xdd   : > { %1835 = vmatprep.subr.bf16.mxu0 %v2723_v35 }
  0xde   : > { %1799 = vmatpush3.bf16.msra.mxu1 %v2777_v6 }
  0xdf   : > { %1800 = vmatprep.subr.bf16.mxu1 %v2397_v38 }
  0xe0   : > { %1837 = vmatpush1.bf16.msra.mxu0 %v2728_v41 }
  0xe1   : > { %1839 = vmatprep.subr.bf16.mxu0 %v2732_v44 }
  0xe2   : > { %1802 = vmatpush3.bf16.msra.mxu1 %v2786_v12 }
  0xe3   : > { %1803 = vmatprep.subr.bf16.mxu1 %v2397_v38 }
  0xe4   : > { %1841 = vmatpush1.bf16.msra.mxu0 %v2737_v51 }
  0xe5   : > { %1843 = vmatprep.subr.bf16.mxu0 %v2741_v53 }
  0xe6   : > { %1805 = vmatpush3.bf16.msra.mxu1 %v2792_v17 }
  0xe7   : > { %1806 = vmatprep.subr.bf16.mxu1 %v2397_v38 }
  0xe8   : > { %1845 = vmatpush1.bf16.msra.mxu0 %v2747_v58 }
  0xe9   : > { %1847 = vmatprep.subr.bf16.mxu0 %v2752_v59 }
  0xea   : > { %1808 = vmatpush3.bf16.msra.mxu1 %v2798_v20 }
  0xeb   : > { %1809 = vmatprep.subr.bf16.mxu1 %v2397_v38 }
  0xec   : > { %1849 = vmatpush1.bf16.msra.mxu0 %v2756_v62 }
  0xed   : > { %1875 = vmatprep.subr.bf16.mxu0 %v2697_v4  ;;  %v454_v4 = vlaneseq }
  0xee   : > { %1811 = vmatpush3.bf16.msra.mxu1 %v2804_v24 }
  0xef   : > { %1812 = vmatprep.subr.bf16.mxu1 %v2397_v38  ;;  %v455_v34 = vshrl.u32 %v454_v4, 7 }
  0xf1   : > { %v456_v37 = vsub.s32 0, %v455_v34  ;;  %v460_v40 = vsub.s32 1, %v455_v34  ;;  %v464_v49 = vsub.s32 2, %v455_v34 }
  0xf2   : > { %1814 = vmatpush3.bf16.msra.mxu1 %v2810_v28 }
  0xf3   : > { %1815 = vmatprep.subr.bf16.mxu1 %v2397_v38  ;;  %v2843_v42 = vrot.slane %v452_v39, %v456_v37  ;;  %v2845_v43 = vrot.slane %v452_v39, %v460_v40  ;;  %v2851_v48 = vrot.slane %v690_v45, %v456_v37  ;;  %v2854_v54 = vrot.slane %v690_v45, %v460_v40 }
  0xf4   : > { %v465_v55 = vrot.slane %v452_v39, %v464_v49  ;;  %v2862_v27 = vrot.slane %v690_v45, %v464_v49  ;;  %v873_v45 = vstv %s872_s9 }
  0xf5   : > { %vm874_vm2 = vcmp.eq.s32.totalorder %v873_v45, 1 }
  0xf6   : > { %1817 = vmatpush3.bf16.msra.mxu1 %v2816_v31 }
  0xf7   : > { %1850 = vmatprep.subr.bf16.mxu1 %v2397_v38 }
  0xf9   : > { %1642 = vmatmul.mubr.f32.vlgmr.msra.gmra.mrb[2].mxu1 %v2765_v1 }
  0xfa   : > { %1852 = vmatpush3.bf16.msra.mxu1 %v2767_v2  ;;  %1676 = vmatprep.mubr.msk.f32.mxu1 %vm2398_vm1, %v2396_v8 }
  0xfb   : > { %1853 = vmatprep.subr.bf16.mxu1 %v2397_v38 }
  0xfe   : > { %1855 = vmatpush3.bf16.msra.mxu1 %v2777_v6 }
  0xff   : > { %1856 = vmatprep.subr.bf16.mxu1 %v2397_v38 }
 0x102   : > { %1858 = vmatpush3.bf16.msra.mxu1 %v2786_v12 }
 0x103   : > { %1859 = vmatprep.subr.bf16.mxu1 %v2397_v38 }
 0x106   : > { %1861 = vmatpush3.bf16.msra.mxu1 %v2792_v17 }
 0x107   : > { %1862 = vmatprep.subr.bf16.mxu1 %v2397_v38 }
 0x10a   : > { %1864 = vmatpush3.bf16.msra.mxu1 %v2798_v20 }
 0x10b   : > { %1865 = vmatprep.subr.bf16.mxu1 %v2397_v38 }
 0x10e   : > { %1867 = vmatpush3.bf16.msra.mxu1 %v2804_v24 }
 0x10f   : > { %1868 = vmatprep.subr.bf16.mxu1 %v2397_v38 }
 0x112   : > { %1870 = vmatpush3.bf16.msra.mxu1 %v2810_v28 }
 0x113   : > { %1871 = vmatprep.subr.bf16.mxu1 %v2397_v38 }
 0x116   : > { %1873 = vmatpush3.bf16.msra.mxu1 %v2816_v31 }
 0x117   : > { %1906 = vmatprep.subr.bf16.mxu1 %v2397_v38 }
 0x196   : > { %v545_v32 = vpop.f32.mrb[0].mxu0 }
 0x197   : > { %v547_v36 = vpop.f32.mrb[1].mxu0  ;;  %v546_v47 = vadd.f32 %v545_v32, %v2843_v42 }
 0x198   : > { %v548_v52 = vadd.f32 %v547_v36, %v2845_v43 }
 0x199   : > { %v1955_v57 = vadd.f32 %v2851_v48, %v546_v47 }
 0x19a   : > { %v1958_v63 = vadd.f32 %v2854_v54, %v548_v52 }
 0x1a2   : > { %v628_v46 = vpop.f32.mrb[6].mxu0 }
 0x1a3   : > { %v1602_v50 = vpop.f32.mrb[7].mxu0  ;;  %v629_v32 = vadd.f32 %v628_v46, %v465_v55 }
 0x1a6   : > { %v633_v56 = vpop.f32.mrb[8].mxu0 }
 0x1a7   : > { %v2857_v60 = vadd.f32 %v633_v56, %v465_v55  ;;  %v1605_v61 = vpop.f32.mrb[9].mxu0  ;;  %v1216_v56 = vld [vmem:[#allocation11 + $0x10] sm:$0xff] }
 0x1aa   : > { %v638_v3 = vpop.f32.mrb[10].mxu0 }
 0x1ab   : > { %v2860_v11 = vadd.f32 %v638_v3, %v465_v55  ;;  %v1608_v13 = vpop.f32.mrb[11].mxu0 }
 0x1ac   : > { %v774_v0 = vpop.f32.mrb[0].mxu1 }
 0x1ad   : > { %v1956_v5 = vadd.f32 %v1955_v57, %v774_v0  ;;  %v776_v7 = vpop.f32.mrb[1].mxu1  ;;  %v1217_v57 = vld [vmem:[#allocation11 + $0x18] sm:$0xff]  ;;  %v1219_v0 = vld [vmem:[#allocation11 + $0x28] sm:$0xff] }
 0x1ae   : > { %v1959_v14 = vadd.f32 %v1958_v63, %v776_v7  ;;  %v1934_v61 = vpack.c.bf16 %v1217_v57, %v1216_v56  ;;  %v1218_v63 = vld [vmem:[#allocation11 + $0x20] sm:$0xff]  ;;  %v1221_v7 = vld [vmem:[#allocation11 + $0x38] sm:$0xff] }
 0x1af   : > { %v1507_v18 = vmul.f32 -1.442695, %v1956_v5  ;;  %v1937_v3 = vpack.c.bf16 %v1219_v0, %v1218_v63  ;;  %v1220_v5 = vld [vmem:[#allocation11 + $0x30] sm:$0xff] }
 0x1b0   : > { %v1508_v19 = vmul.f32 -1.442695, %v1959_v14  ;;  %v1940_v13 = vpack.c.bf16 %v1221_v7, %v1220_v5  ;;  %v1222_v14 = vld [vmem:[#allocation11 + $0x40] sm:$0xff] }
 0x1b1   : > { %2093 = vpow2.f32 %v1507_v18  ;;  %v1223_v18 = vld [vmem:[#allocation11 + $0x48] sm:$0xff] }
 0x1b2   : > { %2095 = vpow2.f32 %v1508_v19  ;;  %v1943_v19 = vpack.c.bf16 %v1223_v18, %v1222_v14 }
 0x1bb   : > { %v2094_v22 = vpop.eup %2093 }
 0x1bc   : > { %v853_v23 = vadd.f32 1.0, %v2094_v22  ;;  %v2096_v26 = vpop.eup %2095  ;;  %v1224_v22 = vld [vmem:[#allocation11 + $0x50] sm:$0xff] }
 0x1bd   : > { %v860_v29 = vadd.f32 1.0, %v2096_v26 }
 0x1be   : > { %2097 = vrcp.f32 %v853_v23  ;;  %v1225_v23 = vld [vmem:[#allocation11 + $0x58] sm:$0xff] }
 0x1bf   : > { %2099 = vrcp.f32 %v860_v29  ;;  %v1946_v26 = vpack.c.bf16 %v1225_v23, %v1224_v22  ;;  %v1226_v29 = vld [vmem:[#allocation11 + $0x60] sm:$0xff] }
 0x1c8   : > { %v2098_v36 = vpop.eup %2097 }
 0x1c9   : > { %v2100_v40 = vpop.eup %2099 }
 0x1ca   : > { %v866_v47 = vsub.f32 1.0, %v2100_v40  ;;  %v868_v52 = vmul.f32 %v2100_v40, %v2765_v1 }
 0x1cc   : > { %v845_v30 = vpop.f32.mrb[2].mxu1 }
 0x1cd   : > { %v846_v4 = vadd.f32 %v845_v30, %v2862_v27  ;;  %v1643_v34 = vpop.f32.mrb[3].mxu1  ;;  %v1227_v30 = vld [vmem:[#allocation11 + $0x68] sm:$0xff] }
 0x1ce   : > { %v1229_v34 = vld [vmem:[#allocation11 + $0x78] sm:$0xff] }
 0x1cf   : > { %v863_v37 = vmul.f32 %v2098_v36, %v846_v4  ;;  %v1949_v4 = vpack.c.bf16 %v1227_v30, %v1226_v29 }
 0x1d1   : > { %v864_v39 = vadd.f32 %v863_v37, %v629_v32  ;;  %v1228_v32 = vld [vmem:[#allocation11 + $0x70] sm:$0xff] }
 0x1d2   : > { %v1952_v36 = vpack.c.bf16 %v1229_v34, %v1228_v32 }
 0x1d3   : > { %2101 = vtanh.f32 %v864_v39 }
 0x1dd   : > { %v2102_v49 = vpop.eup %2101 }
 0x1de   : > { %v867_v50 = vmul.f32 %v2102_v49, %v866_v47 }
 0x1e0   : > { %v869_v46 = vadd.f32 %v868_v52, %v867_v50 }
 0x1e2   : > { %v2871_v55 = vsel %vm874_vm2, %v869_v46, %v2765_v1 }
 0x1e3   : > { %941 = vmatmul.mubr.f32.vlgmr.msra.gmra.mrb[2].mxu0 %v2871_v55  ;;  %1677 = vmatmul.mubr.f32.vlgmr.msra.gmra.mrb[4].mxu1 %v2871_v55 }
 0x1e4   : > { %1877 = vmatpush1.bf16.msra.mxu0 %v2701_v9  ;;  %1908 = vmatpush3.bf16.msra.mxu1 %v2767_v2  ;;  %v2911_v9 = vadd.f32 %v2851_v48, %v2843_v42 }
 0x1e5   : > { %1879 = vmatprep.subr.bf16.mxu0 %v2703_v10  ;;  %1909 = vmatprep.subr.bf16.mxu1 %v2397_v38 }
 0x1e6   : > { %1108 = vmatprep.mubr.f32.mxu0 %v2396_v8  ;;  %1711 = vmatprep.mubr.msk.f32.mxu1 %vm2398_vm1, %v2396_v8 }
 0x1e8   : > { %1881 = vmatpush1.bf16.msra.mxu0 %v2707_v15  ;;  %1911 = vmatpush3.bf16.msra.mxu1 %v2777_v6 }
 0x1e9   : > { %1883 = vmatprep.subr.bf16.mxu0 %v2710_v16  ;;  %1912 = vmatprep.subr.bf16.mxu1 %v2397_v38  ;;  %v2915_v16 = vadd.f32 %v2854_v54, %v2845_v43 }
 0x1ec   : > { %1885 = vmatpush1.bf16.msra.mxu0 %v2713_v21  ;;  %1914 = vmatpush3.bf16.msra.mxu1 %v2786_v12 }
 0x1ed   : > { %1887 = vmatprep.subr.bf16.mxu0 %v2716_v25  ;;  %1915 = vmatprep.subr.bf16.mxu1 %v2397_v38 }
 0x1f0   : > { %1889 = vmatpush1.bf16.msra.mxu0 %v2719_v33  ;;  %1917 = vmatpush3.bf16.msra.mxu1 %v2792_v17 }
 0x1f1   : > { %1891 = vmatprep.subr.bf16.mxu0 %v2723_v35  ;;  %1918 = vmatprep.subr.bf16.mxu1 %v2397_v38 }
 0x1f4   : > { %1893 = vmatpush1.bf16.msra.mxu0 %v2728_v41  ;;  %1920 = vmatpush3.bf16.msra.mxu1 %v2798_v20  ;;  %v1041_v20 = vstv %s1040_s30 }
 0x1f5   : > { %1895 = vmatprep.subr.bf16.mxu0 %v2732_v44  ;;  %1921 = vmatprep.subr.bf16.mxu1 %v2397_v38  ;;  %vm1042_vm3 = vcmp.eq.s32.totalorder %v1041_v20, 1 }
 0x1f8   : > { %1897 = vmatpush1.bf16.msra.mxu0 %v2737_v51  ;;  %1923 = vmatpush3.bf16.msra.mxu1 %v2804_v24 }
 0x1f9   : > { %1899 = vmatprep.subr.bf16.mxu0 %v2741_v53  ;;  %1924 = vmatprep.subr.bf16.mxu1 %v2397_v38 }
 0x1fc   : > { %1901 = vmatpush1.bf16.msra.mxu0 %v2747_v58  ;;  %1926 = vmatpush3.bf16.msra.mxu1 %v2810_v28  ;;  %v1214_v28 = vld [vmem:[#allocation11] sm:$0xff] }
 0x1fd   : > { %1903 = vmatprep.subr.bf16.mxu0 %v2752_v59  ;;  %1927 = vmatprep.subr.bf16.mxu1 %v2397_v38 }
 0x200   : > { %1905 = vmatpush1.bf16.msra.mxu0 %v2756_v62  ;;  %1929 = vmatpush3.bf16.msra.mxu1 %v2816_v31  ;;  %v1215_v31 = vld [vmem:[#allocation11 + $0x8] sm:$0xff] }
 0x201   : > { %1930 = vmatprep.subr.bf16.mxu0 %v2397_v38  ;;  %v1931_v54 = vpack.c.bf16 %v1215_v31, %v1214_v28 }
 0x2b6   : > { %v942_v10 = vpop.f32.mrb[2].mxu0  ;;  %v1013_v15 = vpop.f32.mrb[4].mxu1 }
 0x2b7   : > { %v1961_v21 = vadd.f32 %v2911_v9, %v942_v10  ;;  %v944_v25 = vpop.f32.mrb[3].mxu0  ;;  %v1678_v33 = vpop.f32.mrb[5].mxu1  ;;  %v1014_v62 = vadd.f32 %v1013_v15, %v2862_v27 }
 0x2b8   : > { %v1963_v41 = vadd.f32 %v2915_v16, %v944_v25 }
 0x2b9   : > { %v1509_v35 = vmul.f32 -1.442695, %v1961_v21 }
 0x2ba   : > { %v1510_v44 = vmul.f32 -1.442695, %v1963_v41 }
 0x2bb   : > { %2103 = vpow2.f32 %v1509_v35 }
 0x2bc   : > { %2105 = vpow2.f32 %v1510_v44 }
 0x2c5   : > { %v2104_v51 = vpop.eup %2103 }
 0x2c6   : > { %v1021_v53 = vadd.f32 1.0, %v2104_v51  ;;  %v2106_v58 = vpop.eup %2105 }
 0x2c7   : > { %v1028_v59 = vadd.f32 1.0, %v2106_v58  ;;  %v1209_v58 = vstv %s1208_s23 }
 0x2c8   : > { %2107 = vrcp.f32 %v1021_v53  ;;  %vm1210_vm4 = vcmp.eq.s32.totalorder %v1209_v58, 1 }
 0x2c9   : > { %2109 = vrcp.f32 %v1028_v59 }
 0x2d2   : > { %v2108_v1 = vpop.eup %2107 }
 0x2d3   : > { %v1031_v2 = vmul.f32 %v2108_v1, %v1014_v62  ;;  %v2110_v12 = vpop.eup %2109 }
 0x2d4   : > { %v1034_v17 = vsub.f32 1.0, %v2110_v12  ;;  %v1036_v43 = vmul.f32 %v2110_v12, %v2871_v55 }
 0x2d5   : > { %v1032_v6 = vadd.f32 %v1031_v2, %v2857_v60 }
 0x2d7   : > { %2111 = vtanh.f32 %v1032_v6 }
 0x2e1   : > { %v2112_v24 = vpop.eup %2111 }
 0x2e2   : > { %v1035_v42 = vmul.f32 %v2112_v24, %v1034_v17 }
 0x2e4   : > { %v1037_v48 = vadd.f32 %v1036_v43, %v1035_v42 }
 0x2e6   : > { %v2924_v60 = vsel %vm1042_vm3, %v1037_v48, %v2871_v55 }
 0x2e7   : > { %1109 = vmatmul.mubr.f32.vlgmr.msra.gmra.mrb[4].mxu0 %v2924_v60  ;;  %1712 = vmatmul.mubr.f32.vlgmr.msra.gmra.mrb[6].mxu1 %v2924_v60 }
 0x2e8   : > { %1932 = vmatpush3.bf16.msra.mxu0 %v1931_v54  ;;  %1746 = vmatprep.mubr.msk.f32.mxu0 %vm2398_vm1, %v2396_v8 }
 0x2e9   : > { %1933 = vmatprep.subr.bf16.mxu0 %v2397_v38 }
 0x2ec   : > { %1935 = vmatpush3.bf16.msra.mxu0 %v1934_v61 }
 0x2ed   : > { %1936 = vmatprep.subr.bf16.mxu0 %v2397_v38 }
 0x2f0   : > { %1938 = vmatpush3.bf16.msra.mxu0 %v1937_v3 }
 0x2f1   : > { %1939 = vmatprep.subr.bf16.mxu0 %v2397_v38 }
 0x2f4   : > { %1941 = vmatpush3.bf16.msra.mxu0 %v1940_v13 }
 0x2f5   : > { %1942 = vmatprep.subr.bf16.mxu0 %v2397_v38 }
 0x2f8   : > { %1944 = vmatpush3.bf16.msra.mxu0 %v1943_v19 }
 0x2f9   : > { %1945 = vmatprep.subr.bf16.mxu0 %v2397_v38 }
 0x2fc   : > { %1947 = vmatpush3.bf16.msra.mxu0 %v1946_v26 }
 0x2fd   : > { %1948 = vmatprep.subr.bf16.mxu0 %v2397_v38 }
 0x300   : > { %1950 = vmatpush3.bf16.msra.mxu0 %v1949_v4 }
 0x301   : > { %1951 = vmatprep.subr.bf16.mxu0 %v2397_v38 }
 0x304   : > { %1953 = vmatpush3.bf16.msra.mxu0 %v1952_v36 }
 0x307   : > { %1747 = vmatmul.mubr.f32.vlgmr.msra.gmra.mrb[12].mxu0 %v2871_v55 }
 0x308   : > { %1749 = vmatprep.mubr.msk.f32.mxu0 %vm2398_vm1, %v2396_v8 }
 0x30b   : > { %1750 = vmatmul.mubr.f32.gmra.mrb[14].mxu0 %v2924_v60 }
 0x30c   : > { %1752 = vmatprep.mubr.msk.f32.mxu0 %vm2398_vm1, %v2396_v8 }
 0x3ba   : > { %v1110_v37 = vpop.f32.mrb[4].mxu0  ;;  %v1181_v39 = vpop.f32.mrb[6].mxu1 }
 0x3bb   : > { %v1965_v40 = vadd.f32 %v2911_v9, %v1110_v37  ;;  %v1112_v47 = vpop.f32.mrb[5].mxu0  ;;  %v1713_v45 = vpop.f32.mrb[7].mxu1  ;;  %v1182_v8 = vadd.f32 %v1181_v39, %v2862_v27  ;;  %v1513_v9 = vld [vmem:[%s3040_s7] ss:$0 sm:$0xff] }
 0x3bc   : > { %v1967_v38 = vadd.f32 %v2915_v16, %v1112_v47 }
 0x3bd   : > { %v1511_v49 = vmul.f32 -1.442695, %v1965_v40 }
 0x3be   : > { %v1512_v50 = vmul.f32 -1.442695, %v1967_v38 }
 0x3bf   : > { %2113 = vpow2.f32 %v1511_v49 }
 0x3c0   : > { %2115 = vpow2.f32 %v1512_v50 }
 0x3c9   : > { %v2114_v52 = vpop.eup %2113 }
 0x3ca   : > { %v1189_v46 = vadd.f32 1.0, %v2114_v52  ;;  %v2116_v55 = vpop.eup %2115 }
 0x3cb   : > { %v1196_v10 = vadd.f32 1.0, %v2116_v55 }
 0x3cc   : > { %2117 = vrcp.f32 %v1189_v46 }
 0x3cd   : > { %2119 = vrcp.f32 %v1196_v10 }
 0x3d6   : > { %v2118_v15 = vpop.eup %2117 }
 0x3d7   : > { %v1199_v21 = vmul.f32 %v2118_v15, %v1182_v8  ;;  %v2120_v51 = vpop.eup %2119 }
 0x3d8   : > { %v1202_v53 = vsub.f32 1.0, %v2120_v51 }
 0x3d9   : > { %v1200_v16 = vadd.f32 %v1199_v21, %v2860_v11  ;;  %v1204_v11 = vmul.f32 %v2120_v51, %v2924_v60 }
 0x3da   : > { %v1303_v25 = vpop.f32.mrb[12].mxu0 }
 0x3db   : > { %2121 = vtanh.f32 %v1200_v16  ;;  %v1304_v33 = vadd.f32 %v1513_v9, %v1303_v25  ;;  %v1748_v35 = vpop.f32.mrb[13].mxu0 }
 0x3dd   : > { %1317 = vst [vmem:[%s2694_s21] sm:$0xff] %v1304_v33 }
 0x3de   : > { %v1308_v41 = vpop.f32.mrb[14].mxu0 }
 0x3df   : > { %v1309_v44 = vadd.f32 %v1513_v9, %v1308_v41  ;;  %v1751_v27 = vpop.f32.mrb[15].mxu0 }
 0x3e1   : > { %1318 = vst [vmem:[%s2694_s21 + $0x8] sm:$0xff] %v1309_v44 }
 0x3e5   : > { %v2122_v59 = vpop.eup %2121 }
 0x3e6   : > { %v1203_v62 = vmul.f32 %v2122_v59, %v1202_v53 }
 0x3e8   : > { %v1205_v1 = vadd.f32 %v1204_v11, %v1203_v62 }
 0x3ea   : > { %v1211_v2 = vsel %vm1210_vm4, %v1205_v1, %v2924_v60 }
 0x3eb   : > { %1212 = vst [vmem:[#allocation2] sm:$0xff] %v1211_v2  ;;  %1753 = vmatmul.mubr.f32.gmra.mrb[16].mxu0 %v1211_v2  ;;  %1213 = vst [vmem:[#allocation13] sm:$0xff] %v1211_v2 }
 0x3ec   : > { %2278 = shalt.err (!%p2275_p7)
}
 0x3ed   : > { %s3076_s25 = sld [smem:[#allocation25_spill]] }
 0x3f3   : > { %s2279_s20 = scalar_lea.hbm %s3076_s25, 128 }
 0x3f4   : > { %p2280_p10 = scmp.ne.s32.totalorder %s3076_s25, %s2279_s20  ;;  %p2285_p2 = scmp.lt.u32.totalorder %s2279_s20, %s3076_s25 }
 0x3f6   : > { %p2281_p13 = pnand %p2280_p10, %p3075_p0 }
 0x3f8   : > { %p2282_p1 = pneg %p2281_p13 }
 0x3fa   : > { %p2287_p4 = pnand %p2285_p2, %p2282_p1 }
 0x3fc   : > { %2290 = shalt.err (!%p2287_p4)
}
 0x3fd   : > { %1994 = dma.vmem_to_hbm [thread:$0]  (%p3075_p0), %s1352_s22, 128, %s3076_s25, [#allocation14]  }
 0x3fe   : > { %s1520_s23 = smul.u32 384, %s2377_s12  ;;  %s1335_s28 = sshll.u32 %s2694_s21, 4  ;;  %s2980_s28 = int_to_ptr.vmem [resolvable:$true] %s1335_s28 }
 0x3ff   : > { %s3077_s3 = sld [smem:[#allocation24_spill]]  ;;  %s1321_s9 = scalar_lea.sflag [#allocation5], %s2676_s29 }
 0x400   : > { %s2291_s1 = scalar_lea.vmem %s2980_s28, 384  ;;  %s2400_s12 = smov [#allocation12]  }
 0x401   : > { %p2292_p8 = scmp.ne.s32.totalorder %s2980_s28, %s2291_s1  ;;  %s2295_s22 = sshll.u32 %s2400_s12, 4  ;;  %s2296_s22 = int_to_ptr.vmem [resolvable:$false] %s2295_s22 }
 0x402   : > { %s2297_s30 = scalar_lea.vmem %s2296_s22, 768  ;;  %p2298_p12 = scmp.lt.s32.totalorder %s2980_s28, %s2296_s22 }
 0x403   : > { %p2293_p5 = pnand %p2292_p8, %p2620_p6  ;;  %p2299_p11 = scmp.lt.s32.totalorder %s2297_s30, %s2291_s1 }
 0x405   : > { %s2978_s20 = scalar_lea.hbm %s3077_s3, %s1520_s23  ;;  %p2294_p9 = pneg %p2293_p5 }
 0x406   : > { %p2300_p3 = por %p2299_p11, %p2298_p12 }
 0x408   : > { %p2301_p7 = pnand %p2300_p3, %p2294_p9 }
 0x4be   : > { %v1313_v6 = vpop.f32.mrb[16].mxu0 }
 0x4bf   : > { %v1314_v12 = vadd.f32 %v1513_v9, %v1313_v6  ;;  %v1754_v17 = vpop.f32.mrb[17].mxu0 }
 0x4c1   : > { %1319 = vst [vmem:[%s2694_s21 + $0x10] sm:$0xff] %v1314_v12 }
 0x4c2   : > { %2304 = shalt.err (!%p2301_p7)
}
 0x4c3   : > { %s2305_s21 = scalar_lea.hbm %s2978_s20, 384  ;;  %s2309_s8 = scalar_lea.hbm %s3077_s3, 1152 }
 0x4c4   : > { %p2306_p10 = scmp.ne.s32.totalorder %s2978_s20, %s2305_s21  ;;  %p2310_p2 = scmp.lt.u32.totalorder %s2978_s20, %s3077_s3 }
 0x4c5   : > { %p2311_p4 = scmp.lt.u32.totalorder %s2309_s8, %s2305_s21  ;;  %p2313_p5 = scmp.lt.u32.totalorder %s2305_s21, %s2978_s20 }
 0x4c6   : > { %p2307_p13 = pnand %p2306_p10, %p2620_p6 }
 0x4c7   : > { %p2312_p8 = por %p2311_p4, %p2310_p2 }
 0x4c8   : > { %p2308_p1 = pneg %p2307_p13 }
 0x4c9   : > { %p2314_p9 = por %p2313_p5, %p2312_p8 }
 0x4cb   : > { %p2315_p12 = pnand %p2314_p9, %p2308_p1 }
 0x4cd   : > { %2318 = shalt.err (!%p2315_p12)
}
 0x4ce   : > { %s2401_s19 = smov 128   ;;  %s2402_s1 = smov 8  }
 0x4cf   : > { %1992 = dma.vmem_to_hbm [thread:$0]  (%p2620_p6), %s2980_s28, 384, %s2978_s20, %s1321_s9, %s2401_s19, %s2401_s19, %s2402_s1  }
 0x4d0   : > { %2356 = dma.done.wait (%p3075_p0), [#allocation14], 128  }
 0x4d1   : > { %2358 = vsyncadd (%p3075_p0), [#allocation14], 4294967168 }
 0x4d2 PF: > { %s3078_s12 = sld [smem:[#allocation20_spill]]  ;;  %s3079_s22 = sld [smem:[#allocation21_spill]] }
 0x4d3   : > { %p2030_p11 = scmp.ge.s32.totalorder %s2385_s14, 2 }
 0x4d8   : > { %s1367_s30 = sand.u32 1, %s3078_s12   ;;  %p3080_p3 = scmp.ne.s32.totalorder %s3079_s22, 0 }
 0x4d9   : > { %s1368_s21 = scalar_lea.sflag [#allocation5], %s1367_s30 }
 0x4da   : > { %p2016_p7 = pnand %p2030_p11, %p3080_p3 }
 0x4dc   : > { %2360 = dma.done.wait (!%p2016_p7), %s1368_s21, 384  }
 0x4dd   : > { %2362 = vsyncadd (!%p2016_p7), %s1368_s21, 4294966912  ;;  %s29_s14 = sadd.s32 1, %s2385_s14   ;;  %s3081_s30 = smov %s2369_s10 }
 0x4de   : > { %p26_p10 = scmp.ge.s32.totalorder %s29_s14, 5   ;;  %s3082_s10 = smov %s2373_s11 }
 0x4df   : > { %s3083_s11 = smov %s2632_s27  ;;  %s3084_s12 = smov %s2381_s13 }
 0x4e0   : > { %s3085_s13 = smov %s3087_s26  ;;  %28 = sbr.rel (!%p26_p10) target bundleno = 14 (0xe), region = 127 }
 0x4e7   :  { %1373 = vsyncpa [#allocation4], 1 }
 0x4e8   :  { %1375 = vsyncpa [#allocation4 + $0x1], 1 }
 0x4e9   :  { %1376 = vsyncpa [#allocation7], 1 }
 0x4ea   :  { %1377 = vsyncpa [#allocation10], 1 }
 0x4eb   :  { %1378 = vsyncpa [#allocation5], 1 }
 0x4ec   :  { %1380 = vsyncpa [#allocation5 + $0x1], 1 }
 0x4ed   :  { %1381 = vsyncpa [#allocation14], 1 }

</bundles_post_ra>
